<compile_context>
chip_gen: v6e
topology: v6e:2x2x1
jax: 0.10.0
libtpu: 0.0.40
codegen_flags: <defaults>
</compile_context>

<pallas_src>
import functools

import jax
import jax.numpy as jnp
from jax import lax
from jax.experimental import pallas as pl
from jax.experimental.pallas import tpu as pltpu

EPS = 1e-5


def _resblock_kernel(x_ref, w1t_ref, s1_ref, b1_ref, w2t_ref, s2_ref, b2_ref,
                     out_ref, lhs1_ref, lhs2_ref, *, BT, H, W, Cin, Cout):
    """One grid step = one batch block, lane-dense layout (last dim = W*C).

    x_ref   : (BT, H, W*Cin)       input; also the residual (identity path)
    w1t_ref : (3*W*Cin, W*Cout)    conv1 block-Toeplitz weights
    s1/b1   : (1, W*Cout)          folded BN1 scale/bias, tiled over W
    w2t_ref : (3*W*Cout, W*Cout)   conv2 block-Toeplitz weights
    s2/b2   : (1, W*Cout)          folded BN2 scale/bias, tiled over W
    out_ref : (BT, H, W*Cout)
    lhs1_ref: (BT, H, 3*W*Cin)     VMEM scratch: conv1 matmul LHS
    lhs2_ref: (BT, H, 3*W*Cout)    VMEM scratch: conv2 matmul LHS
    """
    S1 = W * Cin
    S2 = W * Cout
    M = BT * H

    # ---- conv1 LHS: three row-shifted copies of x at lane offsets 0,S1,2*S1.
    # Width (column) padding is folded into the Toeplitz weights; only the
    # first row of the dy=0 segment and last row of the dy=2 segment need
    # explicit zeros (height padding).
    lhs1_ref[:, 0:1, 0:S1] = jnp.zeros((BT, 1, S1), jnp.float32)
    lhs1_ref[:, H - 1:H, 2 * S1:3 * S1] = jnp.zeros((BT, 1, S1), jnp.float32)
    lhs1_ref[:, 1:H, 0:S1] = x_ref[:, 0:H - 1, :]           # dy = 0 (rows i-1)
    lhs1_ref[:, :, S1:2 * S1] = x_ref[...]                  # dy = 1 (rows i)
    lhs1_ref[:, 0:H - 1, 2 * S1:3 * S1] = x_ref[:, 1:H, :]  # dy = 2 (rows i+1)

    # ---- conv1 (single MXU matmul) + folded BN1 + ReLU, all lane-dense.
    a1 = lhs1_ref[...].reshape(M, 3 * S1)
    y1 = jnp.dot(a1, w1t_ref[...], preferred_element_type=jnp.float32)
    y1 = jnp.maximum(y1 * s1_ref[...] + b1_ref[...], 0.0)
    y1 = y1.reshape(BT, H, S2)          # leading-dim split only (no relayout)

    # ---- conv2 LHS from y1 (same row-shift trick; y1 stays in registers,
    # no padded y1 round-trip through VMEM).
    lhs2_ref[:, 0:1, 0:S2] = jnp.zeros((BT, 1, S2), jnp.float32)
    lhs2_ref[:, H - 1:H, 2 * S2:3 * S2] = jnp.zeros((BT, 1, S2), jnp.float32)
    lhs2_ref[:, 1:H, 0:S2] = y1[:, 0:H - 1, :]
    lhs2_ref[:, :, S2:2 * S2] = y1
    lhs2_ref[:, 0:H - 1, 2 * S2:3 * S2] = y1[:, 1:H, :]

    # ---- conv2 + folded BN2 + residual add + final ReLU (lane-dense store).
    a2 = lhs2_ref[...].reshape(M, 3 * S2)
    y2 = jnp.dot(a2, w2t_ref[...], preferred_element_type=jnp.float32)
    y2 = (y2 * s2_ref[...] + b2_ref[...]).reshape(BT, H, S2)
    out_ref[...] = jnp.maximum(y2 + x_ref[...], 0.0).astype(out_ref.dtype)


def _fold_bn(conv_bias, gamma, beta, mean, var):
    """Fold conv bias + eval-mode BatchNorm into per-channel scale/bias."""
    s = gamma / jnp.sqrt(var + EPS)
    b = (conv_bias - mean) * s + beta
    return s, b


def _make_toeplitz(w_hwio, width):
    """Expand a 3x3 HWIO kernel into a (3*width*Cin, width*Cout) block-Toeplitz
    matrix implementing a stride-1, padding-1 conv along the width axis.
    Row index = dy*width*Cin + w*Cin + ci ; column index = j*Cout + co."""
    kh, kw, cin, cout = w_hwio.shape
    assert kh == 3 and kw == 3
    j = jnp.arange(width)                       # output column
    w = jnp.arange(width)                       # input column
    dx = w[:, None] - j[None, :] + 1            # (width, width) kernel tap
    valid = ((dx >= 0) & (dx < 3)).astype(w_hwio.dtype)
    t = w_hwio[:, jnp.clip(dx, 0, 2), :, :]     # (3, width, width, cin, cout)
    t = t * valid[None, :, :, None, None]
    t = jnp.transpose(t, (0, 1, 3, 2, 4))       # (3, width, cin, width, cout)
    return t.reshape(3 * width * cin, width * cout)


def mel_resblock_forward(x_nchw, params, *, stride=1, batch_block=None):
    """Forward pass of MelResBlock (conv_for_identity=None path, eval-mode BN)."""
    B, Cin, H, W = x_nchw.shape
    Cout = params["w1"].shape[-1]
    # TODO(synk): projection shortcut (conv_for_identity) and stride>1 are not
    # implemented; the identity path requires Cin == Cout and stride == 1.
    assert Cin == Cout and stride == 1
    BT = B if batch_block is None else batch_block
    assert B % BT == 0

    f32 = jnp.float32
    # NCHW -> lane-dense (B, H, W*Cin); layout plumbing done once by XLA.
    x = jnp.transpose(x_nchw, (0, 2, 3, 1)).astype(f32).reshape(B, H, W * Cin)

    # Fold conv bias + BN (eval mode) and tile to the (W*C) lane layout.
    s1, b1 = _fold_bn(params["cb1"], params["g1"], params["be1"],
                      params["m1"], params["v1"])
    s2, b2 = _fold_bn(params["cb2"], params["g2"], params["be2"],
                      params["m2"], params["v2"])
    s1t = jnp.tile(s1, W).reshape(1, W * Cout).astype(f32)
    b1t = jnp.tile(b1, W).reshape(1, W * Cout).astype(f32)
    s2t = jnp.tile(s2, W).reshape(1, W * Cout).astype(f32)
    b2t = jnp.tile(b2, W).reshape(1, W * Cout).astype(f32)

    w1t = _make_toeplitz(params["w1"].astype(f32), W)   # (3*W*Cin,  W*Cout)
    w2t = _make_toeplitz(params["w2"].astype(f32), W)   # (3*W*Cout, W*Cout)

    kernel = functools.partial(_resblock_kernel, BT=BT, H=H, W=W,
                               Cin=Cin, Cout=Cout)

    out = pl.pallas_call(
        kernel,
        out_shape=jax.ShapeDtypeStruct((B, H, W * Cout), f32),
        grid_spec=pltpu.PrefetchScalarGridSpec(
            num_scalar_prefetch=0,
            grid=(B // BT,),
            in_specs=[
                pl.BlockSpec((BT, H, W * Cin), lambda b: (b, 0, 0)),
                pl.BlockSpec((3 * W * Cin, W * Cout), lambda b: (0, 0)),
                pl.BlockSpec((1, W * Cout), lambda b: (0, 0)),
                pl.BlockSpec((1, W * Cout), lambda b: (0, 0)),
                pl.BlockSpec((3 * W * Cout, W * Cout), lambda b: (0, 0)),
                pl.BlockSpec((1, W * Cout), lambda b: (0, 0)),
                pl.BlockSpec((1, W * Cout), lambda b: (0, 0)),
            ],
            out_specs=pl.BlockSpec((BT, H, W * Cout), lambda b: (b, 0, 0)),
            scratch_shapes=[
                pltpu.VMEM((BT, H, 3 * W * Cin), f32),
                pltpu.VMEM((BT, H, 3 * W * Cout), f32),
            ],
        ),
        compiler_params=pltpu.CompilerParams(
            dimension_semantics=("parallel",),
            # TODO(synk): for production shapes add a spatial row-block grid
            # axis (with a 1-row halo) and raise this limit per generation.
            vmem_limit_bytes=32 * 1024 * 1024,
        ),
    )(x, w1t, s1t, b1t, w2t, s2t, b2t)

    out = out.reshape(B, H, W, Cout)
    return jnp.transpose(out, (0, 3, 1, 2))   # back to NCHW


def ref_forward(x_nchw, params, *, stride=1):
    """Pure-JAX reference (eval-mode BatchNorm)."""
    x = jnp.transpose(x_nchw, (0, 2, 3, 1)).astype(jnp.float32)

    def conv_bn(h, w, cb, g, be, m, v, s, relu):
        y = lax.conv_general_dilated(h, w, (s, s), ((1, 1), (1, 1)),
                                     dimension_numbers=("NHWC", "HWIO", "NHWC"))
        y = y + cb
        y = (y - m) / jnp.sqrt(v + EPS) * g + be
        return jnp.maximum(y, 0.0) if relu else y

    y = conv_bn(x, params["w1"], params["cb1"], params["g1"], params["be1"],
                params["m1"], params["v1"], stride, True)
    y = conv_bn(y, params["w2"], params["cb2"], params["g2"], params["be2"],
                params["m2"], params["v2"], 1, False)
    y = jnp.maximum(y + x, 0.0)
    return jnp.transpose(y, (0, 3, 1, 2))


def init_params(key, cin, cout):
    ks = jax.random.split(key, 12)
    return {
        # conv weights stored HWIO
        "w1": jax.random.normal(ks[0], (3, 3, cin, cout), jnp.float32) * 0.1,
        "cb1": jax.random.normal(ks[1], (cout,), jnp.float32) * 0.1,
        "g1": jax.random.uniform(ks[2], (cout,), jnp.float32, 0.5, 1.5),
        "be1": jax.random.normal(ks[3], (cout,), jnp.float32) * 0.1,
        "m1": jax.random.normal(ks[4], (cout,), jnp.float32) * 0.1,
        "v1": jax.random.uniform(ks[5], (cout,), jnp.float32, 0.5, 1.5),
        "w2": jax.random.normal(ks[6], (3, 3, cout, cout), jnp.float32) * 0.1,
        "cb2": jax.random.normal(ks[7], (cout,), jnp.float32) * 0.1,
        "g2": jax.random.uniform(ks[8], (cout,), jnp.float32, 0.5, 1.5),
        "be2": jax.random.normal(ks[9], (cout,), jnp.float32) * 0.1,
        "m2": jax.random.normal(ks[10], (cout,), jnp.float32) * 0.1,
        "v2": jax.random.uniform(ks[11], (cout,), jnp.float32, 0.5, 1.5),
    }


if __name__ == "__main__":
    key = jax.random.PRNGKey(0)
    kx, kp = jax.random.split(key)

    B, C, H, W = 2, 8, 16, 16          # in_channels == out_channels, stride=1
    x = jax.random.normal(kx, (B, C, H, W), jnp.float32)   # PyTorch NCHW
    params = init_params(kp, C, C)

    out = mel_resblock_forward(x, params, stride=1)
    out = jax.block_until_ready(out)

    ref = jax.block_until_ready(ref_forward(x, params, stride=1))
    assert out.shape == (B, C, H, W)
    assert jnp.allclose(out, ref, rtol=1e-4, atol=1e-4), (
        f"max abs err = {jnp.max(jnp.abs(out - ref))}")

    print("KERNEL_OK")
</pallas_src>

<mosaic_0001>
module attributes {stable_mosaic.version = 11 : i64} {
  func.func @_resblock_kernel(%arg0: i32, %arg1: memref<2x16x128xf32, #tpu.memory_space<vmem>>, %arg2: memref<384x128xf32, #tpu.memory_space<vmem>>, %arg3: memref<1x128xf32, #tpu.memory_space<vmem>>, %arg4: memref<1x128xf32, #tpu.memory_space<vmem>>, %arg5: memref<384x128xf32, #tpu.memory_space<vmem>>, %arg6: memref<1x128xf32, #tpu.memory_space<vmem>>, %arg7: memref<1x128xf32, #tpu.memory_space<vmem>>, %arg8: memref<2x16x128xf32, #tpu.memory_space<vmem>>, %arg9: memref<2x16x384xf32, #tpu.memory_space<vmem>>, %arg10: memref<2x16x384xf32, #tpu.memory_space<vmem>>) attributes {dimension_semantics = [#tpu.dimension_semantics<parallel>], iteration_bounds = array<i64: 1>, scalar_prefetch = 0 : i64, scratch_operands = 2 : i64, tpu.core_type = #tpu.core_type<tc>, window_params = [{transform_indices = @transform_0, window_bounds = array<i64: 2, 16, 128>}, {pipeline_mode = #tpu.pipeline_mode<synchronous>, transform_indices = @transform_1, window_bounds = array<i64: 384, 128>}, {pipeline_mode = #tpu.pipeline_mode<synchronous>, transform_indices = @transform_2, window_bounds = array<i64: 1, 128>}, {pipeline_mode = #tpu.pipeline_mode<synchronous>, transform_indices = @transform_3, window_bounds = array<i64: 1, 128>}, {pipeline_mode = #tpu.pipeline_mode<synchronous>, transform_indices = @transform_4, window_bounds = array<i64: 384, 128>}, {pipeline_mode = #tpu.pipeline_mode<synchronous>, transform_indices = @transform_5, window_bounds = array<i64: 1, 128>}, {pipeline_mode = #tpu.pipeline_mode<synchronous>, transform_indices = @transform_6, window_bounds = array<i64: 1, 128>}, {transform_indices = @transform_7, window_bounds = array<i64: 2, 16, 128>}]} {
    %cst = arith.constant 0.000000e+00 : f32
    %0 = vector.broadcast %cst : f32 to vector<2x1x128xf32>
    %c0 = arith.constant 0 : index
    %c0_0 = arith.constant 0 : index
    %c0_1 = arith.constant 0 : index
    %1 = vector.load %arg9[%c0, %c0_0, %c0_1] : memref<2x16x384xf32, #tpu.memory_space<vmem>>, vector<2x1x128xf32>
    tpu.vector_store %arg9[%c0, %c0_0, %c0_1], %0 {strides = array<i32>} : memref<2x16x384xf32, #tpu.memory_space<vmem>>, vector<2x1x128xf32>,
    %cst_2 = arith.constant 0.000000e+00 : f32
    %2 = vector.broadcast %cst_2 : f32 to vector<2x1x128xf32>
    %c0_3 = arith.constant 0 : index
    %c15 = arith.constant 15 : index
    %c256 = arith.constant 256 : index
    %3 = vector.load %arg9[%c0_3, %c15, %c256] : memref<2x16x384xf32, #tpu.memory_space<vmem>>, vector<2x1x128xf32>
    tpu.vector_store %arg9[%c0_3, %c15, %c256], %2 {strides = array<i32>} : memref<2x16x384xf32, #tpu.memory_space<vmem>>, vector<2x1x128xf32>,
    %c0_4 = arith.constant 0 : index
    %c0_5 = arith.constant 0 : index
    %c0_6 = arith.constant 0 : index
    %4 = vector.load %arg1[%c0_4, %c0_5, %c0_6] : memref<2x16x128xf32, #tpu.memory_space<vmem>>, vector<2x15x128xf32>
    %c0_7 = arith.constant 0 : index
    %c1 = arith.constant 1 : index
    %c0_8 = arith.constant 0 : index
    %5 = vector.load %arg9[%c0_7, %c1, %c0_8] : memref<2x16x384xf32, #tpu.memory_space<vmem>>, vector<2x15x128xf32>
    tpu.vector_store %arg9[%c0_7, %c1, %c0_8], %4 {strides = array<i32>} : memref<2x16x384xf32, #tpu.memory_space<vmem>>, vector<2x15x128xf32>,
    %c0_9 = arith.constant 0 : index
    %c0_10 = arith.constant 0 : index
    %c0_11 = arith.constant 0 : index
    %6 = vector.load %arg1[%c0_9, %c0_10, %c0_11] : memref<2x16x128xf32, #tpu.memory_space<vmem>>, vector<2x16x128xf32>
    %c0_12 = arith.constant 0 : index
    %c0_13 = arith.constant 0 : index
    %c128 = arith.constant 128 : index
    %7 = vector.load %arg9[%c0_12, %c0_13, %c128] : memref<2x16x384xf32, #tpu.memory_space<vmem>>, vector<2x16x128xf32>
    tpu.vector_store %arg9[%c0_12, %c0_13, %c128], %6 {strides = array<i32>} : memref<2x16x384xf32, #tpu.memory_space<vmem>>, vector<2x16x128xf32>,
    %c0_14 = arith.constant 0 : index
    %c1_15 = arith.constant 1 : index
    %c0_16 = arith.constant 0 : index
    %8 = vector.load %arg1[%c0_14, %c1_15, %c0_16] : memref<2x16x128xf32, #tpu.memory_space<vmem>>, vector<2x15x128xf32>
    %c0_17 = arith.constant 0 : index
    %c0_18 = arith.constant 0 : index
    %c256_19 = arith.constant 256 : index
    %9 = vector.load %arg9[%c0_17, %c0_18, %c256_19] : memref<2x16x384xf32, #tpu.memory_space<vmem>>, vector<2x15x128xf32>
    tpu.vector_store %arg9[%c0_17, %c0_18, %c256_19], %8 {strides = array<i32>} : memref<2x16x384xf32, #tpu.memory_space<vmem>>, vector<2x15x128xf32>,
    %c0_20 = arith.constant 0 : index
    %c0_21 = arith.constant 0 : index
    %c0_22 = arith.constant 0 : index
    %10 = vector.load %arg9[%c0_20, %c0_21, %c0_22] : memref<2x16x384xf32, #tpu.memory_space<vmem>>, vector<2x16x384xf32>
    %11 = vector.shape_cast %10 : vector<2x16x384xf32> to vector<32x384xf32>
    %c0_23 = arith.constant 0 : index
    %c0_24 = arith.constant 0 : index
    %12 = vector.load %arg2[%c0_23, %c0_24] : memref<384x128xf32, #tpu.memory_space<vmem>>, vector<384x128xf32>
    %cst_25 = arith.constant dense<0.000000e+00> : vector<32x128xf32>
    %13 = tpu.matmul %11, %12, %cst_25 {dimension_numbers = #tpu.dot_dimension_numbers<[1], [0], [0], [1], [0, 0, 1, 1], [], []>} : vector<32x384xf32>, vector<384x128xf32>, vector<32x128xf32> -> vector<32x128xf32>
    %c0_26 = arith.constant 0 : index
    %c0_27 = arith.constant 0 : index
    %14 = vector.load %arg3[%c0_26, %c0_27] : memref<1x128xf32, #tpu.memory_space<vmem>>, vector<1x128xf32>
    %15 = vector.broadcast %14 : vector<1x128xf32> to vector<32x128xf32>
    %16 = arith.mulf %13, %15 : vector<32x128xf32>
    %c0_28 = arith.constant 0 : index
    %c0_29 = arith.constant 0 : index
    %17 = vector.load %arg4[%c0_28, %c0_29] : memref<1x128xf32, #tpu.memory_space<vmem>>, vector<1x128xf32>
    %18 = vector.broadcast %17 : vector<1x128xf32> to vector<32x128xf32>
    %19 = arith.addf %16, %18 : vector<32x128xf32>
    %cst_30 = arith.constant 0.000000e+00 : f32
    %20 = vector.broadcast %cst_30 : f32 to vector<32x128xf32>
    %21 = arith.maximumf %19, %20 : vector<32x128xf32>
    %22 = vector.shape_cast %21 : vector<32x128xf32> to vector<2x16x128xf32>
    %cst_31 = arith.constant 0.000000e+00 : f32
    %23 = vector.broadcast %cst_31 : f32 to vector<2x1x128xf32>
    %c0_32 = arith.constant 0 : index
    %c0_33 = arith.constant 0 : index
    %c0_34 = arith.constant 0 : index
    %24 = vector.load %arg10[%c0_32, %c0_33, %c0_34] : memref<2x16x384xf32, #tpu.memory_space<vmem>>, vector<2x1x128xf32>
    tpu.vector_store %arg10[%c0_32, %c0_33, %c0_34], %23 {strides = array<i32>} : memref<2x16x384xf32, #tpu.memory_space<vmem>>, vector<2x1x128xf32>,
    %cst_35 = arith.constant 0.000000e+00 : f32
    %25 = vector.broadcast %cst_35 : f32 to vector<2x1x128xf32>
    %c0_36 = arith.constant 0 : index
    %c15_37 = arith.constant 15 : index
    %c256_38 = arith.constant 256 : index
    %26 = vector.load %arg10[%c0_36, %c15_37, %c256_38] : memref<2x16x384xf32, #tpu.memory_space<vmem>>, vector<2x1x128xf32>
    tpu.vector_store %arg10[%c0_36, %c15_37, %c256_38], %25 {strides = array<i32>} : memref<2x16x384xf32, #tpu.memory_space<vmem>>, vector<2x1x128xf32>,
    %27 = vector.extract_strided_slice %22 {offsets = [0, 0, 0], sizes = [2, 15, 128], strides = [1, 1, 1]} : vector<2x16x128xf32> to vector<2x15x128xf32>
    %c0_39 = arith.constant 0 : index
    %c1_40 = arith.constant 1 : index
    %c0_41 = arith.constant 0 : index
    %28 = vector.load %arg10[%c0_39, %c1_40, %c0_41] : memref<2x16x384xf32, #tpu.memory_space<vmem>>, vector<2x15x128xf32>
    tpu.vector_store %arg10[%c0_39, %c1_40, %c0_41], %27 {strides = array<i32>} : memref<2x16x384xf32, #tpu.memory_space<vmem>>, vector<2x15x128xf32>,
    %c0_42 = arith.constant 0 : index
    %c0_43 = arith.constant 0 : index
    %c128_44 = arith.constant 128 : index
    %29 = vector.load %arg10[%c0_42, %c0_43, %c128_44] : memref<2x16x384xf32, #tpu.memory_space<vmem>>, vector<2x16x128xf32>
    tpu.vector_store %arg10[%c0_42, %c0_43, %c128_44], %22 {strides = array<i32>} : memref<2x16x384xf32, #tpu.memory_space<vmem>>, vector<2x16x128xf32>,
    %30 = vector.extract_strided_slice %22 {offsets = [0, 1, 0], sizes = [2, 15, 128], strides = [1, 1, 1]} : vector<2x16x128xf32> to vector<2x15x128xf32>
    %c0_45 = arith.constant 0 : index
    %c0_46 = arith.constant 0 : index
    %c256_47 = arith.constant 256 : index
    %31 = vector.load %arg10[%c0_45, %c0_46, %c256_47] : memref<2x16x384xf32, #tpu.memory_space<vmem>>, vector<2x15x128xf32>
    tpu.vector_store %arg10[%c0_45, %c0_46, %c256_47], %30 {strides = array<i32>} : memref<2x16x384xf32, #tpu.memory_space<vmem>>, vector<2x15x128xf32>,
    %c0_48 = arith.constant 0 : index
    %c0_49 = arith.constant 0 : index
    %c0_50 = arith.constant 0 : index
    %32 = vector.load %arg10[%c0_48, %c0_49, %c0_50] : memref<2x16x384xf32, #tpu.memory_space<vmem>>, vector<2x16x384xf32>
    %33 = vector.shape_cast %32 : vector<2x16x384xf32> to vector<32x384xf32>
    %c0_51 = arith.constant 0 : index
    %c0_52 = arith.constant 0 : index
    %34 = vector.load %arg5[%c0_51, %c0_52] : memref<384x128xf32, #tpu.memory_space<vmem>>, vector<384x128xf32>
    %cst_53 = arith.constant dense<0.000000e+00> : vector<32x128xf32>
    %35 = tpu.matmul %33, %34, %cst_53 {dimension_numbers = #tpu.dot_dimension_numbers<[1], [0], [0], [1], [0, 0, 1, 1], [], []>} : vector<32x384xf32>, vector<384x128xf32>, vector<32x128xf32> -> vector<32x128xf32>
    %c0_54 = arith.constant 0 : index
    %c0_55 = arith.constant 0 : index
    %36 = vector.load %arg6[%c0_54, %c0_55] : memref<1x128xf32, #tpu.memory_space<vmem>>, vector<1x128xf32>
    %37 = vector.broadcast %36 : vector<1x128xf32> to vector<32x128xf32>
    %38 = arith.mulf %35, %37 : vector<32x128xf32>
    %c0_56 = arith.constant 0 : index
    %c0_57 = arith.constant 0 : index
    %39 = vector.load %arg7[%c0_56, %c0_57] : memref<1x128xf32, #tpu.memory_space<vmem>>, vector<1x128xf32>
    %40 = vector.broadcast %39 : vector<1x128xf32> to vector<32x128xf32>
    %41 = arith.addf %38, %40 : vector<32x128xf32>
    %42 = vector.shape_cast %41 : vector<32x128xf32> to vector<2x16x128xf32>
    %c0_58 = arith.constant 0 : index
    %c0_59 = arith.constant 0 : index
    %c0_60 = arith.constant 0 : index
    %43 = vector.load %arg1[%c0_58, %c0_59, %c0_60] : memref<2x16x128xf32, #tpu.memory_space<vmem>>, vector<2x16x128xf32>
    %44 = arith.addf %42, %43 : vector<2x16x128xf32>
    %cst_61 = arith.constant 0.000000e+00 : f32
    %45 = vector.broadcast %cst_61 : f32 to vector<2x16x128xf32>
    %46 = arith.maximumf %44, %45 : vector<2x16x128xf32>
    %c0_62 = arith.constant 0 : index
    %c0_63 = arith.constant 0 : index
    %c0_64 = arith.constant 0 : index
    %47 = vector.load %arg8[%c0_62, %c0_63, %c0_64] : memref<2x16x128xf32, #tpu.memory_space<vmem>>, vector<2x16x128xf32>
    tpu.vector_store %arg8[%c0_62, %c0_63, %c0_64], %46 {strides = array<i32>} : memref<2x16x128xf32, #tpu.memory_space<vmem>>, vector<2x16x128xf32>,
    return
  }
  func.func @transform_0(%arg0: i32) -> (i32, i32, i32) {
    %c0_i32 = arith.constant 0 : i32
    %c0_i32_0 = arith.constant 0 : i32
    %c0_i32_1 = arith.constant 0 : i32
    return %arg0, %c0_i32, %c0_i32_0 : i32, i32, i32
  }
  func.func @transform_1(%arg0: i32) -> (i32, i32) {
    %c0_i32 = arith.constant 0 : i32
    %c0_i32_0 = arith.constant 0 : i32
    %c0_i32_1 = arith.constant 0 : i32
    return %c0_i32, %c0_i32_0 : i32, i32
  }
  func.func @transform_2(%arg0: i32) -> (i32, i32) {
    %c0_i32 = arith.constant 0 : i32
    %c0_i32_0 = arith.constant 0 : i32
    %c0_i32_1 = arith.constant 0 : i32
    return %c0_i32, %c0_i32_0 : i32, i32
  }
  func.func @transform_3(%arg0: i32) -> (i32, i32) {
    %c0_i32 = arith.constant 0 : i32
    %c0_i32_0 = arith.constant 0 : i32
    %c0_i32_1 = arith.constant 0 : i32
    return %c0_i32, %c0_i32_0 : i32, i32
  }
  func.func @transform_4(%arg0: i32) -> (i32, i32) {
    %c0_i32 = arith.constant 0 : i32
    %c0_i32_0 = arith.constant 0 : i32
    %c0_i32_1 = arith.constant 0 : i32
    return %c0_i32, %c0_i32_0 : i32, i32
  }
  func.func @transform_5(%arg0: i32) -> (i32, i32) {
    %c0_i32 = arith.constant 0 : i32
    %c0_i32_0 = arith.constant 0 : i32
    %c0_i32_1 = arith.constant 0 : i32
    return %c0_i32, %c0_i32_0 : i32, i32
  }
  func.func @transform_6(%arg0: i32) -> (i32, i32) {
    %c0_i32 = arith.constant 0 : i32
    %c0_i32_0 = arith.constant 0 : i32
    %c0_i32_1 = arith.constant 0 : i32
    return %c0_i32, %c0_i32_0 : i32, i32
  }
  func.func @transform_7(%arg0: i32) -> (i32, i32, i32) {
    %c0_i32 = arith.constant 0 : i32
    %c0_i32_0 = arith.constant 0 : i32
    %c0_i32_1 = arith.constant 0 : i32
    return %arg0, %c0_i32, %c0_i32_0 : i32, i32, i32
  }
}

</mosaic_0001>

<bundles_post_ra>
// kernel: tpu_custom_call.1
= control target key start
LH: loop header
LB: loop body
LE: loop exit
PB: predicated region body
PF: predicated region fallthrough
CT: control target
= control target key end

     0   :  { %12 = vsyncpa [#allocation5], 0  ;;  %s1111_s0 = inlined_call_operand.hbm [shape: f32[2,16,128], index: 0, kind: input, shape index: {}]   ;;  %s1112_s1 = inlined_call_operand.hbm [shape: f32[384,128], index: 1, kind: input, shape index: {}]   ;;  %s1113_s2 = inlined_call_operand.vmem [shape: f32[1,128], index: 2, kind: input, shape index: {}]   ;;  %s1114_s3 = inlined_call_operand.vmem [shape: f32[1,128], index: 3, kind: input, shape index: {}]   ;;  %s1115_s4 = inlined_call_operand.hbm [shape: f32[384,128], index: 4, kind: input, shape index: {}]   ;;  %s1116_s5 = inlined_call_operand.vmem [shape: f32[1,128], index: 5, kind: input, shape index: {}]   ;;  %s1117_s6 = inlined_call_operand.vmem [shape: f32[1,128], index: 6, kind: input, shape index: {}]   ;;  %s1118_s7 = inlined_call_operand.hbm [shape: f32[2,16,128], index: 7, kind: output, shape index: {}]  }
   0x1   :  { %13 = vsyncpa [#allocation8], 0 }
   0x2   :  { %14 = vsyncpa [#allocation6], 0  ;;  %s995_s24 = smov [#allocation7]   ;;  %s996_s26 = smov [#allocation4]  }
   0x3   :  { %s32_s25 = sshll.u32 %s995_s24, 4  ;;  %s20_s27 = sshll.u32 %s996_s26, 4  ;;  %s33_s25 = int_to_ptr.vmem [resolvable:$true] %s32_s25  ;;  %s21_s27 = int_to_ptr.vmem [resolvable:$true] %s20_s27 }
   0x4   :  { %s917_s28 = scalar_lea.vmem %s33_s25, 6144  ;;  %p922_p1 = scmp.lt.s32.totalorder %s33_s25, %s33_s25 }
   0x5   :  { %p918_p0 = scmp.ne.s32.totalorder %s33_s25, %s917_s28  ;;  %p923_p2 = scmp.lt.s32.totalorder %s917_s28, %s917_s28 }
   0x7   :  { %p924_p3 = por %p923_p2, %p922_p1 }
   0x9   :  { %p925_p4 = pnand %p924_p3, %p918_p0 }
   0xb   :  { %928 = shalt.err (!%p925_p4)
}
   0xc   :  { %s997_s29 = smov 128   ;;  %s998_s30 = smov 8  }
   0xd   :  { %38 = dma.hbm_to_vmem [thread:$0]  %s1112_s1, 6144, %s33_s25, [#allocation8], %s997_s29, %s997_s29, %s998_s30  }
   0xe   :  { %s937_s10 = scalar_lea.vmem %s21_s27, 512  ;;  %p942_p6 = scmp.lt.s32.totalorder %s21_s27, %s21_s27 }
   0xf   :  { %p938_p5 = scmp.ne.s32.totalorder %s21_s27, %s937_s10  ;;  %p943_p7 = scmp.lt.s32.totalorder %s937_s10, %s937_s10 }
  0x11   :  { %p944_p8 = por %p943_p7, %p942_p6 }
  0x13   :  { %p945_p9 = pnand %p944_p8, %p938_p5 }
  0x15   :  { %948 = shalt.err (!%p945_p9)
}
  0x16   :  { %26 = dma.hbm_to_vmem [thread:$0]  %s1111_s0, 512, %s21_s27, [#allocation5], %s997_s29, %s997_s29, %s998_s30  }
  0x17   :  { %s999_s13 = smov [#allocation9]  }
  0x18   :  { %s48_s14 = sshll.u32 %s999_s13, 4  ;;  %s49_s14 = int_to_ptr.vmem [resolvable:$true] %s48_s14 }
  0x19   :  { %s957_s15 = scalar_lea.vmem %s49_s14, 6144  ;;  %p962_p11 = scmp.lt.s32.totalorder %s49_s14, %s49_s14 }
  0x1a   :  { %p958_p10 = scmp.ne.s32.totalorder %s49_s14, %s957_s15  ;;  %p963_p12 = scmp.lt.s32.totalorder %s957_s15, %s957_s15 }
  0x1c   :  { %p964_p13 = por %p963_p12, %p962_p11 }
  0x1e   :  { %p965_p0 = pnand %p964_p13, %p958_p10 }
  0x20   :  { %968 = shalt.err (!%p965_p0)
}
  0x21   :  { %54 = dma.hbm_to_vmem [thread:$0]  %s1115_s4, 6144, %s49_s14, [#allocation8], %s997_s29, %s997_s29, %s998_s30  }
  0x22   :  { %989 = dma.done.wait [#allocation5], 512  }
  0x23   :  { %990 = vsyncadd [#allocation5], 4294966784 }
  0x24   :  { %991 = dma.done.wait [#allocation8], 12288  }
  0x25   :  { %992 = vsyncadd [#allocation8], 4294955008  ;;  %v1000_v0 = vmov 0.0   ;;  %v154_v1 = vld [vmem:[#allocation7 + $0xf8] sm:$0xff]  ;;  %v153_v4 = vld [vmem:[#allocation7 + $0xf0] sm:$0xff]  ;;  %vm80_vm0 = vcmask 1040384  }
  0x26   :  { %68 = vst [vmem:[#allocation2] sm:$0x1] %v1000_v0  ;;  %69 = vst [vmem:[#allocation2 + $0x30] sm:$0x1] %v1000_v0  ;;  %v138_v2 = vld [vmem:[#allocation7 + $0x78] sm:$0xff]  ;;  %698 = vmatprep.subr.mxu0 %v154_v1  ;;  %v137_v5 = vld [vmem:[#allocation7 + $0x70] sm:$0xff] }
  0x27   :  { %70 = vst [vmem:[#allocation2 + $0x2f] sm:$0x1] %v1000_v0  ;;  %71 = vst [vmem:[#allocation2 + $0x5f] sm:$0x1] %v1000_v0  ;;  %v170_v3 = vld [vmem:[#allocation7 + $0x178] sm:$0xff]  ;;  %v169_v6 = vld [vmem:[#allocation7 + $0x170] sm:$0xff]  ;;  %699 = vmatpush3.msra.mxu0 %v138_v2 }
  0x28   :  { %367 = vst [vmem:[#allocation3] sm:$0x1] %v1000_v0  ;;  %368 = vst [vmem:[#allocation3 + $0x30] sm:$0x1] %v1000_v0  ;;  %826 = vmatprep.subr.mxu1 %v170_v3  ;;  %v152_v7 = vld [vmem:[#allocation7 + $0xe8] sm:$0xff]  ;;  %700 = vmatprep.subr.mxu0 %v153_v4  ;;  %v151_v10 = vld [vmem:[#allocation7 + $0xe0] sm:$0xff] }
  0x29   :  { %369 = vst [vmem:[#allocation3 + $0x2f] sm:$0x1] %v1000_v0  ;;  %370 = vst [vmem:[#allocation3 + $0x5f] sm:$0x1] %v1000_v0  ;;  %827 = vmatpush3.msra.mxu1 %v170_v3  ;;  %v168_v8 = vld [vmem:[#allocation7 + $0x168] sm:$0xff]  ;;  %701 = vmatpush3.msra.mxu0 %v137_v5  ;;  %v167_v11 = vld [vmem:[#allocation7 + $0x160] sm:$0xff] }
  0x2a   :  { %828 = vmatprep.subr.mxu1 %v169_v6  ;;  %v136_v9 = vld [vmem:[#allocation7 + $0x68] sm:$0xff]  ;;  %702 = vmatprep.subr.mxu0 %v152_v7  ;;  %v135_v12 = vld [vmem:[#allocation7 + $0x60] sm:$0xff]  ;;  %v150_v13 = vld [vmem:[#allocation7 + $0xd8] sm:$0xff]  ;;  %vm393_vm1 = vcmask 1046528  }
  0x2b   :  { %829 = vmatpush3.msra.mxu1 %v169_v6  ;;  %703 = vmatpush3.msra.mxu0 %v136_v9  ;;  %v166_v14 = vld [vmem:[#allocation7 + $0x158] sm:$0xff]  ;;  %v149_v16 = vld [vmem:[#allocation7 + $0xd0] sm:$0xff]  ;;  %v148_v19 = vld [vmem:[#allocation7 + $0xc8] sm:$0xff] }
  0x2c   :  { %830 = vmatprep.subr.mxu1 %v168_v8  ;;  %704 = vmatprep.subr.mxu0 %v151_v10  ;;  %v134_v15 = vld [vmem:[#allocation7 + $0x58] sm:$0xff]  ;;  %v165_v17 = vld [vmem:[#allocation7 + $0x150] sm:$0xff]  ;;  %v164_v20 = vld [vmem:[#allocation7 + $0x148] sm:$0xff] }
  0x2d   :  { %831 = vmatpush3.msra.mxu1 %v168_v8  ;;  %705 = vmatpush3.msra.mxu0 %v135_v12  ;;  %v133_v18 = vld [vmem:[#allocation7 + $0x50] sm:$0xff]  ;;  %v132_v21 = vld [vmem:[#allocation7 + $0x48] sm:$0xff]  ;;  %v147_v22 = vld [vmem:[#allocation7 + $0xc0] sm:$0xff] }
  0x2e   :  { %832 = vmatprep.subr.mxu1 %v167_v11  ;;  %706 = vmatprep.subr.mxu0 %v150_v13  ;;  %v163_v23 = vld [vmem:[#allocation7 + $0x140] sm:$0xff]  ;;  %v146_v25 = vld [vmem:[#allocation7 + $0xb8] sm:$0xff]  ;;  %v145_v28 = vld [vmem:[#allocation7 + $0xb0] sm:$0xff] }
  0x2f   :  { %833 = vmatpush3.msra.mxu1 %v167_v11  ;;  %707 = vmatpush3.msra.mxu0 %v134_v15  ;;  %v131_v24 = vld [vmem:[#allocation7 + $0x40] sm:$0xff]  ;;  %v130_v26 = vld [vmem:[#allocation7 + $0x38] sm:$0xff]  ;;  %v129_v29 = vld [vmem:[#allocation7 + $0x30] sm:$0xff] }
  0x30   :  { %834 = vmatprep.subr.mxu1 %v166_v14  ;;  %708 = vmatprep.subr.mxu0 %v149_v16  ;;  %v162_v27 = vld [vmem:[#allocation7 + $0x138] sm:$0xff]  ;;  %v161_v30 = vld [vmem:[#allocation7 + $0x130] sm:$0xff]  ;;  %v1060_v31 = vld [vmem:[#allocation4] sm:$0xff] }
  0x31   :  { %835 = vmatpush3.msra.mxu1 %v166_v14  ;;  %709 = vmatpush3.msra.mxu0 %v133_v18  ;;  %v144_v32 = vld [vmem:[#allocation7 + $0xa8] sm:$0xff]  ;;  %v81_v34 = vrot.slane %v1060_v31, 7  ;;  %v1067_v39 = vld [vmem:[#allocation4 + $0x10] sm:$0xff]  ;;  %v106_v43 = vld [vmem:[#allocation4 + $0x19] sm:$0x7f] }
  0x32   :  { %836 = vmatprep.subr.mxu1 %v165_v17  ;;  %710 = vmatprep.subr.mxu0 %v148_v19  ;;  %v160_v33 = vld [vmem:[#allocation7 + $0x128] sm:$0xff]  ;;  %v84_v41 = vrot.slane %v1067_v39, 7  ;;  %v1070_v42 = vld [vmem:[#allocation4 + $0x11] sm:$0xff]  ;;  %110 = vst [vmem:[#allocation2 + $0x58] sm:$0x7f] %v106_v43  ;;  %v143_v47 = vld [vmem:[#allocation7 + $0xa0] sm:$0xff] }
  0x33   :  { %837 = vmatpush3.msra.mxu1 %v165_v17  ;;  %711 = vmatpush3.msra.mxu0 %v132_v21  ;;  %v1063_v35 = vld [vmem:[#allocation4 + $0x1] sm:$0xff]  ;;  %v104_v36 = vld [vmem:[#allocation4 + $0x9] sm:$0x7f]  ;;  %91 = vst [vmem:[#allocation2] sm:$0xfe] %v81_v34  ;;  %v1072_v44 = vld [vmem:[#allocation4 + $0x18] sm:$0xff] }
  0x34   :  { %838 = vmatprep.subr.mxu1 %v164_v20  ;;  %712 = vmatprep.subr.mxu0 %v147_v22  ;;  %108 = vst [vmem:[#allocation2 + $0x28] sm:$0x7f] %v104_v36  ;;  %v1065_v37 = vld [vmem:[#allocation4 + $0x8] sm:$0xff]  ;;  %v75_v46 = vld [vmem:[#allocation4 + $0x18] sm:$0x7f]  ;;  %v159_v48 = vld [vmem:[#allocation7 + $0x120] sm:$0xff] }
  0x35   :  { %839 = vmatpush3.msra.mxu1 %v164_v20  ;;  %713 = vmatpush3.msra.mxu0 %v131_v24  ;;  %v73_v38 = vld [vmem:[#allocation4 + $0x8] sm:$0x7f]  ;;  %93 = vst [vmem:[#allocation2 + $0x30] sm:$0xfe] %v84_v41  ;;  %v85_v50 = vrot.slane %v75_v46, 7  ;;  %v127_v51 = vld [vmem:[#allocation7 + $0x20] sm:$0xff] }
  0x36   :  { %840 = vmatprep.subr.mxu1 %v163_v23  ;;  %714 = vmatprep.subr.mxu0 %v146_v25  ;;  %v82_v40 = vrot.slane %v73_v38, 7  ;;  %v128_v45 = vld [vmem:[#allocation7 + $0x28] sm:$0xff]  ;;  %v142_v52 = vld [vmem:[#allocation7 + $0x98] sm:$0xff]  ;;  %v141_v56 = vld [vmem:[#allocation7 + $0x90] sm:$0xff] }
  0x37   :  { %841 = vmatpush3.msra.mxu1 %v163_v23  ;;  %715 = vmatpush3.msra.mxu0 %v130_v26  ;;  %v158_v53 = vld [vmem:[#allocation7 + $0x118] sm:$0xff]  ;;  %v1076_v54 = vsel %vm80_vm0, %v84_v41, %v85_v50  ;;  %v157_v57 = vld [vmem:[#allocation7 + $0x110] sm:$0xff]  ;;  %v140_v59 = vld [vmem:[#allocation7 + $0x88] sm:$0xff] }
  0x38   :  { %842 = vmatprep.subr.mxu1 %v162_v27  ;;  %716 = vmatprep.subr.mxu0 %v145_v28  ;;  %v83_v49 = vsel %vm80_vm0, %v81_v34, %v82_v40  ;;  %v126_v55 = vld [vmem:[#allocation7 + $0x18] sm:$0xff]  ;;  %v125_v58 = vld [vmem:[#allocation7 + $0x10] sm:$0xff]  ;;  %v156_v60 = vld [vmem:[#allocation7 + $0x108] sm:$0xff] }
  0x39   :  { %843 = vmatpush3.msra.mxu1 %v162_v27  ;;  %717 = vmatpush3.msra.mxu0 %v129_v29  ;;  %v124_v61 = vld [vmem:[#allocation7 + $0x8] sm:$0xff]  ;;  %v139_v62 = vld [vmem:[#allocation7 + $0x80] sm:$0xff]  ;;  %v451_v3 = vld [vmem:[#allocation9 + $0xf8] sm:$0xff] }
  0x3a   :  { %844 = vmatprep.subr.mxu1 %v161_v30  ;;  %718 = vmatprep.subr.mxu0 %v144_v32  ;;  %v123_v63 = vld [vmem:[#allocation7] sm:$0xff]  ;;  %v435_v4 = vld [vmem:[#allocation9 + $0x78] sm:$0xff]  ;;  %v450_v5 = vld [vmem:[#allocation9 + $0xf0] sm:$0xff] }
  0x3b   :  { %845 = vmatpush3.msra.mxu1 %v161_v30  ;;  %719 = vmatpush3.msra.mxu0 %v128_v45  ;;  %v155_v0 = vld [vmem:[#allocation7 + $0x100] sm:$0xff]  ;;  %v116_v2 = vld [vmem:[#allocation2 + $0x28] sm:$0xff]  ;;  %v434_v6 = vld [vmem:[#allocation9 + $0x70] sm:$0xff] }
  0x3c   :  { %846 = vmatprep.subr.mxu1 %v160_v33  ;;  %720 = vmatprep.subr.mxu0 %v143_v47  ;;  %v111_v1 = vld [vmem:[#allocation2] sm:$0xff]  ;;  %v122_v7 = vld [vmem:[#allocation2 + $0x58] sm:$0xff]  ;;  %v449_v8 = vld [vmem:[#allocation9 + $0xe8] sm:$0xff] }
  0x3d   :  { %847 = vmatpush3.msra.mxu1 %v160_v33  ;;  %721 = vmatpush3.msra.mxu0 %v127_v51  ;;  %v433_v9 = vld [vmem:[#allocation9 + $0x68] sm:$0xff]  ;;  %v467_v10 = vld [vmem:[#allocation9 + $0x178] sm:$0xff]  ;;  %v117_v11 = vld [vmem:[#allocation2 + $0x30] sm:$0xff] }
  0x3e   :  { %848 = vmatprep.subr.mxu1 %v159_v48  ;;  %722 = vmatprep.subr.mxu0 %v142_v52  ;;  %v448_v12 = vld [vmem:[#allocation9 + $0xe0] sm:$0xff]  ;;  %v447_v14 = vld [vmem:[#allocation9 + $0xd8] sm:$0xff]  ;;  %v466_v15 = vld [vmem:[#allocation9 + $0x170] sm:$0xff] }
  0x3f   :  { %849 = vmatpush3.msra.mxu1 %v159_v48  ;;  %723 = vmatpush3.msra.mxu0 %v126_v55  ;;  %v432_v13 = vld [vmem:[#allocation9 + $0x60] sm:$0xff]  ;;  %v431_v16 = vld [vmem:[#allocation9 + $0x58] sm:$0xff]  ;;  %v465_v17 = vld [vmem:[#allocation9 + $0x168] sm:$0xff] }
  0x40   :  { %850 = vmatprep.subr.mxu1 %v158_v53  ;;  %724 = vmatprep.subr.mxu0 %v141_v56  ;;  %v446_v18 = vld [vmem:[#allocation9 + $0xd0] sm:$0xff]  ;;  %v464_v19 = vld [vmem:[#allocation9 + $0x160] sm:$0xff]  ;;  %v445_v21 = vld [vmem:[#allocation9 + $0xc8] sm:$0xff] }
  0x41   :  { %851 = vmatpush3.msra.mxu1 %v158_v53  ;;  %725 = vmatpush3.msra.mxu0 %v125_v58  ;;  %v430_v20 = vld [vmem:[#allocation9 + $0x50] sm:$0xff]  ;;  %v463_v22 = vld [vmem:[#allocation9 + $0x158] sm:$0xff]  ;;  %v429_v23 = vld [vmem:[#allocation9 + $0x48] sm:$0xff] }
  0x42   :  { %852 = vmatprep.subr.mxu1 %v157_v57  ;;  %726 = vmatprep.subr.mxu0 %v140_v59  ;;  %v444_v24 = vld [vmem:[#allocation9 + $0xc0] sm:$0xff]  ;;  %v462_v25 = vld [vmem:[#allocation9 + $0x150] sm:$0xff]  ;;  %v443_v27 = vld [vmem:[#allocation9 + $0xb8] sm:$0xff] }
  0x43   :  { %853 = vmatpush3.msra.mxu1 %v157_v57  ;;  %727 = vmatpush3.msra.mxu0 %v124_v61  ;;  %v428_v26 = vld [vmem:[#allocation9 + $0x40] sm:$0xff]  ;;  %v461_v28 = vld [vmem:[#allocation9 + $0x148] sm:$0xff]  ;;  %v427_v29 = vld [vmem:[#allocation9 + $0x38] sm:$0xff] }
  0x44   :  { %854 = vmatprep.subr.mxu1 %v156_v60  ;;  %728 = vmatprep.subr.mxu0 %v139_v62  ;;  %v442_v30 = vld [vmem:[#allocation9 + $0xb0] sm:$0xff]  ;;  %v460_v32 = vld [vmem:[#allocation9 + $0x140] sm:$0xff]  ;;  %v441_v34 = vld [vmem:[#allocation9 + $0xa8] sm:$0xff] }
  0x45   :  { %855 = vmatpush3.msra.mxu1 %v156_v60  ;;  %235 = vmatprep.mubr.f32.mxu0 %v1060_v31  ;;  %v426_v33 = vld [vmem:[#allocation9 + $0x30] sm:$0xff]  ;;  %v425_v36 = vld [vmem:[#allocation9 + $0x28] sm:$0xff]  ;;  %v440_v38 = vld [vmem:[#allocation9 + $0xa0] sm:$0xff] }
  0x46   :  { %729 = vmatpush3.msra.mxu0 %v123_v63  ;;  %856 = vmatprep.subr.mxu1 %v155_v0  ;;  %v458_v40 = vld [vmem:[#allocation9 + $0x130] sm:$0xff]  ;;  %v424_v41 = vld [vmem:[#allocation9 + $0x20] sm:$0xff]  ;;  %v457_v43 = vld [vmem:[#allocation9 + $0x128] sm:$0xff] }
  0x47   :  { %236 = vmatmul.mubr.f32.vlgmr.msra.gmra.mxu0 %v111_v1  ;;  %857 = vmatpush3.msra.mxu1 %v155_v0  ;;  %v423_v45 = vld [vmem:[#allocation9 + $0x18] sm:$0xff]  ;;  %v438_v46 = vld [vmem:[#allocation9 + $0x90] sm:$0xff]  ;;  %v456_v47 = vld [vmem:[#allocation9 + $0x120] sm:$0xff] }
  0x48   :  { %858 = vmatprep.mubr.f32.mxu1 %v1063_v35  ;;  %240 = vmatprep.mubr.f32.mxu0 %v1065_v37  ;;  %v459_v35 = vld [vmem:[#allocation9 + $0x138] sm:$0xff]  ;;  %v422_v48 = vld [vmem:[#allocation9 + $0x10] sm:$0xff]  ;;  %v421_v51 = vld [vmem:[#allocation9 + $0x8] sm:$0xff] }
  0x49   :  { %859 = vmatmul.mubr.f32.vlgmr.msra.gmra.mxu1 %v116_v2  ;;  %762 = vmatprep.subr.mxu0 %v451_v3  ;;  %v455_v50 = vld [vmem:[#allocation9 + $0x118] sm:$0xff]  ;;  %v436_v52 = vld [vmem:[#allocation9 + $0x80] sm:$0xff]  ;;  %v454_v53 = vld [vmem:[#allocation9 + $0x110] sm:$0xff] }
  0x4a   :  { %861 = vmatprep.mubr.f32.mxu1 %v1070_v42  ;;  %763 = vmatpush3.msra.mxu0 %v435_v4  ;;  %v439_v42 = vld [vmem:[#allocation9 + $0x98] sm:$0xff]  ;;  %v453_v55 = vld [vmem:[#allocation9 + $0x108] sm:$0xff]  ;;  %v452_v56 = vld [vmem:[#allocation9 + $0x100] sm:$0xff] }
  0x4b   :  { %241 = vmatmul.mubr.f32.gmra.mxu0 %v83_v49  ;;  %764 = vmatprep.subr.mxu0 %v450_v5  ;;  %v437_v49 = vld [vmem:[#allocation9 + $0x88] sm:$0xff]  ;;  %v694_v62 = vld [vmem:[%s1113_s2] ss:$0 sm:$0xff] }
  0x4c   :  { %245 = vmatprep.mubr.f32.mxu0 %v1067_v39  ;;  %765 = vmatpush3.msra.mxu0 %v434_v6  ;;  %v695_v1 = vld [vmem:[%s1114_s3] ss:$0 sm:$0xff] }
  0x4d   :  { %862 = vmatmul.mubr.f32.gmra.mxu1 %v122_v7  ;;  %766 = vmatprep.subr.mxu0 %v449_v8 }
  0x4e   :  { %767 = vmatpush3.msra.mxu0 %v433_v9  ;;  %864 = vmatprep.subr.mxu1 %v467_v10 }
  0x4f   :  { %246 = vmatmul.mubr.f32.gmra.mxu0 %v117_v11  ;;  %768 = vmatprep.subr.mxu0 %v448_v12 }
  0x50   :  { %250 = vmatprep.mubr.f32.mxu0 %v1072_v44  ;;  %769 = vmatpush3.msra.mxu0 %v432_v13 }
  0x51   :  { %865 = vmatpush3.msra.mxu1 %v467_v10  ;;  %770 = vmatprep.subr.mxu0 %v447_v14 }
  0x52   :  { %866 = vmatprep.subr.mxu1 %v466_v15  ;;  %771 = vmatpush3.msra.mxu0 %v431_v16 }
  0x53   :  { %251 = vmatmul.mubr.f32.gmra.mxu0 %v1076_v54  ;;  %867 = vmatpush3.msra.mxu1 %v466_v15  ;;  %v420_v54 = vld [vmem:[#allocation9] sm:$0xff] }
  0x54   :  { %868 = vmatprep.subr.mxu1 %v465_v17  ;;  %772 = vmatprep.subr.mxu0 %v446_v18 }
  0x55   :  { %869 = vmatpush3.msra.mxu1 %v465_v17  ;;  %773 = vmatpush3.msra.mxu0 %v430_v20 }
  0x56   :  { %870 = vmatprep.subr.mxu1 %v464_v19  ;;  %774 = vmatprep.subr.mxu0 %v445_v21 }
  0x57   :  { %871 = vmatpush3.msra.mxu1 %v464_v19  ;;  %775 = vmatpush3.msra.mxu0 %v429_v23 }
  0x58   :  { %872 = vmatprep.subr.mxu1 %v463_v22  ;;  %776 = vmatprep.subr.mxu0 %v444_v24 }
  0x59   :  { %873 = vmatpush3.msra.mxu1 %v463_v22  ;;  %777 = vmatpush3.msra.mxu0 %v428_v26 }
  0x5a   :  { %874 = vmatprep.subr.mxu1 %v462_v25  ;;  %778 = vmatprep.subr.mxu0 %v443_v27 }
  0x5b   :  { %875 = vmatpush3.msra.mxu1 %v462_v25  ;;  %779 = vmatpush3.msra.mxu0 %v427_v29 }
  0x5c   :  { %876 = vmatprep.subr.mxu1 %v461_v28  ;;  %780 = vmatprep.subr.mxu0 %v442_v30 }
  0x5d   :  { %877 = vmatpush3.msra.mxu1 %v461_v28  ;;  %781 = vmatpush3.msra.mxu0 %v426_v33 }
  0x5e   :  { %878 = vmatprep.subr.mxu1 %v460_v32  ;;  %782 = vmatprep.subr.mxu0 %v441_v34 }
  0x5f   :  { %879 = vmatpush3.msra.mxu1 %v460_v32  ;;  %783 = vmatpush3.msra.mxu0 %v425_v36 }
  0x60   :  { %880 = vmatprep.subr.mxu1 %v459_v35  ;;  %784 = vmatprep.subr.mxu0 %v440_v38 }
  0x61   :  { %881 = vmatpush3.msra.mxu1 %v459_v35  ;;  %785 = vmatpush3.msra.mxu0 %v424_v41 }
  0x62   :  { %882 = vmatprep.subr.mxu1 %v458_v40  ;;  %786 = vmatprep.subr.mxu0 %v439_v42 }
  0x63   :  { %883 = vmatpush3.msra.mxu1 %v458_v40  ;;  %787 = vmatpush3.msra.mxu0 %v423_v45 }
  0x64   :  { %884 = vmatprep.subr.mxu1 %v457_v43  ;;  %788 = vmatprep.subr.mxu0 %v438_v46 }
  0x65   :  { %885 = vmatpush3.msra.mxu1 %v457_v43  ;;  %789 = vmatpush3.msra.mxu0 %v422_v48 }
  0x66   :  { %886 = vmatprep.subr.mxu1 %v456_v47  ;;  %790 = vmatprep.subr.mxu0 %v437_v49 }
  0x67   :  { %887 = vmatpush3.msra.mxu1 %v456_v47  ;;  %791 = vmatpush3.msra.mxu0 %v421_v51 }
  0x68   :  { %888 = vmatprep.subr.mxu1 %v455_v50  ;;  %792 = vmatprep.subr.mxu0 %v436_v52 }
  0x69   :  { %889 = vmatpush3.msra.mxu1 %v455_v50  ;;  %793 = vmatpush3.msra.mxu0 %v420_v54 }
  0x6a   :  { %890 = vmatprep.subr.mxu1 %v454_v53 }
  0x6b   :  { %891 = vmatpush3.msra.mxu1 %v454_v53  ;;  %v696_v53 = vld [vmem:[%s1116_s5] ss:$0 sm:$0xff]  ;;  %s1001_s5 = smov [#allocation10]  }
  0x6c   :  { %892 = vmatprep.subr.mxu1 %v453_v55 }
  0x6d   :  { %893 = vmatpush3.msra.mxu1 %v453_v55 }
  0x6e   :  { %894 = vmatprep.subr.mxu1 %v452_v56 }
  0x6f   :  { %895 = vmatpush3.msra.mxu1 %v452_v56 }
 0x107   :  { %v730_v57 = vpop.f32.mrf.mxu0 }
 0x109   :  { %v860_v58 = vpop.f32.mrf.mxu1  ;;  %v731_v59 = vpop.f32.mrf.mxu0 }
 0x10a   :  { %v732_v60 = vadd.f32 %v731_v59, %v730_v57  ;;  %v697_v57 = vld [vmem:[%s1117_s6] ss:$0 sm:$0xff]  ;;  %s681_s6 = sshll.u32 %s1001_s5, 4  ;;  %s682_s6 = int_to_ptr.vmem [resolvable:$true] %s681_s6 }
 0x10b   :  { %v322_v61 = vpop.f32.mrf.mxu1  ;;  %v733_v63 = vpop.f32.mrf.mxu0  ;;  %s969_s21 = scalar_lea.vmem %s682_s6, 512  ;;  %p974_p2 = scmp.lt.s32.totalorder %s682_s6, %s682_s6 }
 0x10c   :  { %v323_v0 = vadd.f32 %v732_v60, %v322_v61  ;;  %p970_p1 = scmp.ne.s32.totalorder %s682_s6, %s969_s21  ;;  %p975_p3 = scmp.lt.s32.totalorder %s969_s21, %s969_s21 }
 0x10d   :  { %v734_v2 = vpop.f32.mrf.mxu0  ;;  %v863_v6 = vpop.f32.mrf.mxu1 }
 0x10e   :  { %v348_v3 = vmul.f32 %v694_v62, %v323_v0  ;;  %v735_v4 = vadd.f32 %v734_v2, %v733_v63  ;;  %p976_p4 = por %p975_p3, %p974_p2 }
 0x10f   :  { %v736_v5 = vpop.f32.mrf.mxu0  ;;  %v332_v13 = vpop.f32.mrf.mxu1 }
 0x110   :  { %v359_v7 = vadd.f32 %v695_v1, %v348_v3  ;;  %v328_v8 = vadd.f32 %v860_v58, %v735_v4  ;;  %p977_p5 = pnand %p976_p4, %p970_p1 }
 0x111   :  { %v737_v9 = vpop.f32.mrf.mxu0 }
 0x112   :  { %v363_v10 = vmax.f32 %v359_v7, 0.0  ;;  %v349_v11 = vmul.f32 %v694_v62, %v328_v8  ;;  %v738_v12 = vadd.f32 %v737_v9, %v736_v5 }
 0x113   :  { %v739_v14 = vpop.f32.mrf.mxu0 }
 0x114   :  { %v375_v15 = vrot.slane %v363_v10, 7  ;;  %v360_v16 = vadd.f32 %v695_v1, %v349_v11  ;;  %v333_v17 = vadd.f32 %v738_v12, %v332_v13  ;;  %532 = vmatprep.mubr.f32.mxu0 %v363_v10  ;;  %v394_v22 = vrot.slane %v363_v10, 1 }
 0x115   :  { %v740_v18 = vpop.f32.mrf.mxu0 }
 0x116   :  { %385 = vst [vmem:[#allocation3] sm:$0xfe] %v375_v15  ;;  %v364_v19 = vmax.f32 %v360_v16, 0.0  ;;  %v350_v20 = vmul.f32 %v694_v62, %v333_v17  ;;  %v741_v21 = vadd.f32 %v740_v18, %v739_v14 }
 0x118   :  { %v376_v23 = vrot.slane %v364_v19, 7  ;;  %v395_v24 = vrot.slane %v364_v19, 1  ;;  %v361_v25 = vadd.f32 %v695_v1, %v350_v20  ;;  %v338_v26 = vadd.f32 %v863_v6, %v741_v21 }
 0x11a   :  { %v377_v27 = vsel %vm80_vm0, %v375_v15, %v376_v23  ;;  %v396_v28 = vsel %vm393_vm1, %v394_v22, %v395_v24  ;;  %405 = vst [vmem:[#allocation3 + $0x28] sm:$0x7f] %v395_v24  ;;  %v365_v29 = vmax.f32 %v361_v25, 0.0  ;;  %v351_v30 = vmul.f32 %v694_v62, %v338_v26 }
 0x11b   :  { %896 = vmatprep.mubr.f32.mxu1 %v396_v28 }
 0x11c   :  { %v378_v32 = vrot.slane %v365_v29, 7  ;;  %v362_v33 = vadd.f32 %v695_v1, %v351_v30  ;;  %v397_v36 = vrot.slane %v365_v29, 1 }
 0x11d   :  { %v408_v34 = vld [vmem:[#allocation3] sm:$0xff] }
 0x11e   :  { %387 = vst [vmem:[#allocation3 + $0x30] sm:$0xfe] %v378_v32  ;;  %v366_v35 = vmax.f32 %v362_v33, 0.0  ;;  %533 = vmatmul.mubr.f32.vlgmr.msra.gmra.mxu0 %v408_v34 }
 0x11f   :  { %537 = vmatprep.mubr.f32.mxu0 %v364_v19 }
 0x120   :  { %v379_v38 = vrot.slane %v366_v35, 7  ;;  %v398_v40 = vrot.slane %v366_v35, 1 }
 0x121   :  { %v413_v41 = vld [vmem:[#allocation3 + $0x28] sm:$0xff] }
 0x122   :  { %v380_v42 = vsel %vm80_vm0, %v378_v32, %v379_v38  ;;  %v399_v43 = vsel %vm393_vm1, %v397_v36, %v398_v40  ;;  %407 = vst [vmem:[#allocation3 + $0x58] sm:$0x7f] %v398_v40  ;;  %538 = vmatmul.mubr.f32.gmra.mxu0 %v377_v27  ;;  %897 = vmatmul.mubr.f32.vlgmr.msra.gmra.mxu1 %v413_v41 }
 0x123   :  { %542 = vmatprep.mubr.f32.mxu0 %v365_v29  ;;  %899 = vmatprep.mubr.f32.mxu1 %v399_v43 }
 0x125   :  { %v414_v45 = vld [vmem:[#allocation3 + $0x30] sm:$0xff] }
 0x126   :  { %543 = vmatmul.mubr.f32.gmra.mxu0 %v414_v45 }
 0x127   :  { %547 = vmatprep.mubr.f32.mxu0 %v366_v35 }
 0x129   :  { %v419_v46 = vld [vmem:[#allocation3 + $0x58] sm:$0xff] }
 0x12a   :  { %548 = vmatmul.mubr.f32.gmra.mxu0 %v380_v42  ;;  %900 = vmatmul.mubr.f32.gmra.mxu1 %v419_v46 }
 0x1de   :  { %v794_v47 = vpop.f32.mrf.mxu0 }
 0x1e0   :  { %v795_v48 = vpop.f32.mrf.mxu0 }
 0x1e1   :  { %v796_v51 = vadd.f32 %v795_v48, %v794_v47 }
 0x1e2   :  { %v797_v49 = vpop.f32.mrf.mxu0  ;;  %v898_v50 = vpop.f32.mrf.mxu1 }
 0x1e4   :  { %v798_v52 = vpop.f32.mrf.mxu0  ;;  %v619_v54 = vpop.f32.mrf.mxu1 }
 0x1e5   :  { %v799_v55 = vadd.f32 %v798_v52, %v797_v49  ;;  %v620_v56 = vadd.f32 %v796_v51, %v619_v54 }
 0x1e6   :  { %v800_v58 = vpop.f32.mrf.mxu0 }
 0x1e7   :  { %v625_v59 = vadd.f32 %v898_v50, %v799_v55  ;;  %v645_v60 = vmul.f32 %v696_v53, %v620_v56 }
 0x1e8   :  { %v801_v61 = vpop.f32.mrf.mxu0 }
 0x1e9   :  { %v646_v62 = vmul.f32 %v696_v53, %v625_v59  ;;  %v656_v63 = vadd.f32 %v697_v57, %v645_v60  ;;  %v802_v4 = vadd.f32 %v801_v61, %v800_v58 }
 0x1ea   :  { %v803_v0 = vpop.f32.mrf.mxu0  ;;  %v901_v1 = vpop.f32.mrf.mxu1 }
 0x1eb   :  { %v657_v2 = vadd.f32 %v697_v57, %v646_v62  ;;  %v664_v3 = vadd.f32 %v656_v63, %v1060_v31 }
 0x1ec   :  { %v804_v5 = vpop.f32.mrf.mxu0  ;;  %v629_v6 = vpop.f32.mrf.mxu1 }
 0x1ed   :  { %v665_v7 = vadd.f32 %v657_v2, %v1065_v37  ;;  %v668_v8 = vmax.f32 %v664_v3, 0.0  ;;  %v805_v9 = vadd.f32 %v804_v5, %v803_v0  ;;  %v630_v10 = vadd.f32 %v802_v4, %v629_v6 }
 0x1ef   :  { %v669_v11 = vmax.f32 %v665_v7, 0.0  ;;  %672 = vst [vmem:[#allocation10] sm:$0xff] %v668_v8  ;;  %v635_v12 = vadd.f32 %v901_v1, %v805_v9  ;;  %v647_v13 = vmul.f32 %v696_v53, %v630_v10 }
 0x1f1   :  { %673 = vst [vmem:[#allocation10 + $0x8] sm:$0xff] %v669_v11  ;;  %v648_v14 = vmul.f32 %v696_v53, %v635_v12  ;;  %v658_v15 = vadd.f32 %v697_v57, %v647_v13 }
 0x1f3   :  { %v659_v16 = vadd.f32 %v697_v57, %v648_v14  ;;  %v666_v17 = vadd.f32 %v658_v15, %v1067_v39 }
 0x1f5   :  { %v667_v31 = vadd.f32 %v659_v16, %v1072_v44  ;;  %v670_v18 = vmax.f32 %v666_v17, 0.0 }
 0x1f7   :  { %v671_v19 = vmax.f32 %v667_v31, 0.0  ;;  %674 = vst [vmem:[#allocation10 + $0x10] sm:$0xff] %v670_v18 }
 0x1f9   :  { %675 = vst [vmem:[#allocation10 + $0x18] sm:$0xff] %v671_v19 }
 0x1fa   :  { %980 = shalt.err (!%p977_p5)
}
 0x1fb   :  { %687 = dma.vmem_to_hbm [thread:$0]  %s682_s6, 512, %s1118_s7, [#allocation6], %s997_s29, %s997_s29, %s998_s30  }
 0x1fc   :  { %993 = dma.done.wait [#allocation6], 512  }
 0x1fd   :  { %994 = vsyncadd [#allocation6], 4294966784 }
 0x1fe   :  { %691 = vsyncpa [#allocation5], 1 }
 0x1ff   :  { %692 = vsyncpa [#allocation8], 1 }
 0x200   :  { %693 = vsyncpa [#allocation6], 1 }

</bundles_post_ra>
